<compile_context>
chip_gen: v7x
topology: tpu7x:2x2x1
jax: 0.10.0
libtpu: 0.0.40
codegen_flags: <defaults>
</compile_context>

<pallas_src>
import functools

import jax
import jax.numpy as jnp
from jax import lax
from jax.experimental import pallas as pl
from jax.experimental.pallas import tpu as pltpu


def _hamiltonian_kernel(pos_ref, mom_ref, prm_ref, out_ref, *, hidden_dim, phase_dim):
    H, P = hidden_dim, phase_dim

    pos = pos_ref[0]                           # (B, P)   P == 1
    mom = mom_ref[0]                           # (B, P)

    # Static sublane slices of the single packed (2P+4, 4H) parameter block
    # (DMA'd once for the whole grid via the constant index_map).
    w1_pos = prm_ref[0:P, :]                   # (P, 4H)  first-layer rows hit by position
    w1_mom = prm_ref[P:2 * P, :]               # (P, 4H)  first-layer rows hit by momentum
    b1     = prm_ref[2 * P:2 * P + 1, :]       # (1, 4H)  fused first-layer bias
    w2t    = prm_ref[2 * P + 1:2 * P + 3, :]   # (2, 4H)  second layer, transposed (lane-dense)
    b2row  = prm_ref[2 * P + 3:2 * P + 4, :]   # (1, 4H)  [bk2+bv2, bc2, 0, ...]

    # --- first layer on the VPU (a K=3 MXU pass would be pure latency) ---
    # columns of h: [0:H) kinetic, [H:2H) potential, [2H:4H) coupling
    h = pos * w1_pos + mom * w1_mom + b1                              # (B, 4H) f32

    # --- one lane-masked activation: tanh on kinetic lanes, relu elsewhere ---
    lane = lax.broadcasted_iota(jnp.int32, h.shape, 1)
    h = jnp.where(lane < H, jnp.tanh(h), jnp.maximum(h, 0.0))

    # --- second layer: single MXU pass, contracting lane axes (trans_b layout) ---
    y = lax.dot_general(h, w2t, (((1,), (1,)), ((), ())),
                        preferred_element_type=jnp.float32)           # (B, 2)
    y = y + b2row[:, 0:2]
    kp = y[:, 0:1]                             # (B, 1)  kinetic + potential
    cpl = y[:, 1:2]                            # (B, 1)  coupling output (P == 1)

    # P == 1: sum(coupling * pv, -1) == coupling * (position + momentum)
    s = cpl * (pos + mom)                                              # (B, 1)

    # torch broadcast quirk: (B,1) + (B,) -> (B,B)
    # TODO(synk): for production B, tile the (B,B) output with a 2-D parallel grid,
    # >=128-wide lane-dense output blocks, and hoist the (B,1)->(1,B) transpose out
    # of the per-tile path; on v5e the HBM writeback of the (B,B) slab is the roofline.
    out_ref[0] = kp + s.reshape(1, -1)


def pack_params(params, phase_dim, hidden_dim):
    """Host-side fusion of the 12 parameter tensors into ONE lane-dense slab.

    Layout (rows, all 4H lanes wide):
      rows [0, 2P)        fused first-layer weight  (position rows, then momentum rows)
      row  2P             fused first-layer bias    [bk1 | bv1 | bc1]
      rows [2P+1, 2P+3)   fused second-layer weight, TRANSPOSED (row 0: kin+pot col,
                          row 1: coupling col)
      row  2P+3           second-layer bias row     [bk2+bv2, bc2, 0, ...]
    """
    P, H = phase_dim, hidden_dim
    W = 4 * H

    w1f = jnp.zeros((2 * P, W), jnp.float32)
    w1f = w1f.at[P:2 * P, 0:H].set(params["wk1"])        # kinetic reads momentum
    w1f = w1f.at[0:P, H:2 * H].set(params["wv1"])        # potential reads position
    w1f = w1f.at[:, 2 * H:4 * H].set(params["wc1"])      # coupling reads [position, momentum]
    b1f = jnp.concatenate([params["bk1"], params["bv1"], params["bc1"]], axis=-1)  # (1, W)

    w2t = jnp.zeros((2, W), jnp.float32)
    w2t = w2t.at[0:1, 0:H].set(params["wk2"].T)          # kinetic head
    w2t = w2t.at[0:1, H:2 * H].set(params["wv2"].T)      # potential head
    w2t = w2t.at[1:2, 2 * H:4 * H].set(params["wc2"].T)  # coupling head (P == 1)

    b2row = jnp.zeros((1, W), jnp.float32)
    b2row = b2row.at[0, 0].set((params["bk2"] + params["bv2"])[0, 0])
    b2row = b2row.at[0, 1].set(params["bc2"][0, 0])

    return jnp.concatenate([w1f, b1f, w2t, b2row], axis=0)   # (2P+4, 4H)


def hamiltonian_forward(position, momentum, packed_params, *, hidden_dim):
    """position, momentum: (B, P) or (T, B, P) float32.

    Returns (B, B) or (T, B, B) float32 reproducing the torch (B,1)+(B,) broadcast.
    The leading T axis amortizes kernel launch / parameter DMA across repeated
    evaluations (e.g. leapfrog steps): parameters are fetched once and stay
    VMEM-resident, only position/momentum/out stream per grid step.
    """
    squeeze = position.ndim == 2
    if squeeze:
        position = position[None]
        momentum = momentum[None]
    T, B, P = position.shape
    # torch broadcasting in `coupling * pv` only works for phase_dim == 1
    assert P == 1, "HamiltonianNetwork.forward only broadcasts correctly for phase_dim == 1"

    rows = 2 * P + 4
    W = 4 * hidden_dim
    assert packed_params.shape == (rows, W)

    kernel = functools.partial(_hamiltonian_kernel, hidden_dim=hidden_dim, phase_dim=P)
    out = pl.pallas_call(
        kernel,
        out_shape=jax.ShapeDtypeStruct((T, B, B), jnp.float32),
        grid=(T,),
        in_specs=[
            pl.BlockSpec((1, B, P), lambda t: (t, 0, 0)),       # position: streams per step
            pl.BlockSpec((1, B, P), lambda t: (t, 0, 0)),       # momentum: streams per step
            pl.BlockSpec((rows, W), lambda t: (0, 0)),          # params: DMA'd once, VMEM-resident
        ],
        out_specs=pl.BlockSpec((1, B, B), lambda t: (t, 0, 0)),
        compiler_params=pltpu.CompilerParams(dimension_semantics=("parallel",)),
    )(position, momentum, packed_params)
    return out[0] if squeeze else out


def _linear_init(key, fan_in, fan_out):
    """Deterministic init matching nn.Linear default (uniform +-1/sqrt(fan_in)).
    Weight stored pre-transposed as (in, out); bias as (1, out)."""
    kw, kb = jax.random.split(key)
    bound = 1.0 / jnp.sqrt(jnp.float32(fan_in))
    w = jax.random.uniform(kw, (fan_in, fan_out), jnp.float32, -bound, bound)
    b = jax.random.uniform(kb, (1, fan_out), jnp.float32, -bound, bound)
    return w, b


def make_params(key, phase_dim, hidden_dim):
    ks = jax.random.split(key, 6)
    wk1, bk1 = _linear_init(ks[0], phase_dim, hidden_dim)
    wk2, bk2 = _linear_init(ks[1], hidden_dim, 1)
    wv1, bv1 = _linear_init(ks[2], phase_dim, hidden_dim)
    wv2, bv2 = _linear_init(ks[3], hidden_dim, 1)
    wc1, bc1 = _linear_init(ks[4], phase_dim * 2, hidden_dim * 2)
    wc2, bc2 = _linear_init(ks[5], hidden_dim * 2, phase_dim)
    return dict(wk1=wk1, bk1=bk1, wk2=wk2, bk2=bk2,
                wv1=wv1, bv1=bv1, wv2=wv2, bv2=bv2,
                wc1=wc1, bc1=bc1, wc2=wc2, bc2=bc2)


def reference_forward(position, momentum, params):
    """Pure-JAX reference with identical (torch) semantics, on the unfused params."""
    kin = jnp.tanh(momentum @ params["wk1"] + params["bk1"]) @ params["wk2"] + params["bk2"]
    pot = jax.nn.relu(position @ params["wv1"] + params["bv1"]) @ params["wv2"] + params["bv2"]
    pv = jnp.concatenate([position, momentum], axis=-1)
    cpl = jax.nn.relu(pv @ params["wc1"] + params["bc1"]) @ params["wc2"] + params["bc2"]
    s = jnp.sum(cpl * pv, axis=-1)           # (B,)
    return (kin + pot) + s                   # (B,1)+(B,) -> (B,B)


if __name__ == "__main__":
    B = 8
    PHASE_DIM = 1      # torch forward only broadcasts correctly for phase_dim == 1
    HIDDEN_DIM = 32    # 4H = 128 -> one lane tile for the packed slab / hidden activations
    T = 4              # repeated evaluations sharing one launch + one parameter DMA

    key = jax.random.PRNGKey(0)
    k_pos, k_mom, k_params = jax.random.split(key, 3)
    position = jax.random.normal(k_pos, (T, B, PHASE_DIM), jnp.float32)
    momentum = jax.random.normal(k_mom, (T, B, PHASE_DIM), jnp.float32)
    params = make_params(k_params, PHASE_DIM, HIDDEN_DIM)
    packed = pack_params(params, PHASE_DIM, HIDDEN_DIM)   # packed once, outside jit

    fwd = jax.jit(functools.partial(hamiltonian_forward, hidden_dim=HIDDEN_DIM))

    # Multi-evaluation (gridded) path.
    out = jax.block_until_ready(fwd(position, momentum, packed))
    ref = jax.vmap(lambda p, m: reference_forward(p, m, params))(position, momentum)
    assert out.shape == (T, B, B), out.shape
    assert jnp.allclose(out, ref, atol=1e-5, rtol=1e-5), "mismatch vs reference (gridded)"

    # Single-evaluation path (T == 1, squeezed) — same semantics as the torch forward.
    out1 = jax.block_until_ready(fwd(position[0], momentum[0], packed))
    assert out1.shape == (B, B), out1.shape
    assert jnp.allclose(out1, ref[0], atol=1e-5, rtol=1e-5), "mismatch vs reference (single)"

    print("KERNEL_OK")
</pallas_src>

<mosaic_0001>
module attributes {stable_mosaic.version = 11 : i64} {
  func.func @_hamiltonian_kernel(%arg0: i32, %arg1: memref<1x8x1xf32, #tpu.memory_space<vmem>>, %arg2: memref<1x8x1xf32, #tpu.memory_space<vmem>>, %arg3: memref<6x128xf32, #tpu.memory_space<vmem>>, %arg4: memref<1x8x8xf32, #tpu.memory_space<vmem>>) attributes {dimension_semantics = [#tpu.dimension_semantics<parallel>], iteration_bounds = array<i64: 4>, scalar_prefetch = 0 : i64, scratch_operands = 0 : i64, tpu.core_type = #tpu.core_type<tc>, window_params = [{transform_indices = @transform_0, window_bounds = array<i64: 1, 8, 1>}, {transform_indices = @transform_1, window_bounds = array<i64: 1, 8, 1>}, {pipeline_mode = #tpu.pipeline_mode<synchronous>, transform_indices = @transform_2, window_bounds = array<i64: 6, 128>}, {transform_indices = @transform_3, window_bounds = array<i64: 1, 8, 8>}]} {
    %c0 = arith.constant 0 : index
    %c0_0 = arith.constant 0 : index
    %c0_1 = arith.constant 0 : index
    %0 = vector.load %arg1[%c0, %c0_0, %c0_1] : memref<1x8x1xf32, #tpu.memory_space<vmem>>, vector<1x8x1xf32>
    %1 = vector.shape_cast %0 : vector<1x8x1xf32> to vector<8x1xf32>
    %c0_2 = arith.constant 0 : index
    %c0_3 = arith.constant 0 : index
    %c0_4 = arith.constant 0 : index
    %2 = vector.load %arg2[%c0_2, %c0_3, %c0_4] : memref<1x8x1xf32, #tpu.memory_space<vmem>>, vector<1x8x1xf32>
    %3 = vector.shape_cast %2 : vector<1x8x1xf32> to vector<8x1xf32>
    %c0_5 = arith.constant 0 : index
    %c0_6 = arith.constant 0 : index
    %4 = vector.load %arg3[%c0_5, %c0_6] : memref<6x128xf32, #tpu.memory_space<vmem>>, vector<1x128xf32>
    %c1 = arith.constant 1 : index
    %c0_7 = arith.constant 0 : index
    %5 = vector.load %arg3[%c1, %c0_7] : memref<6x128xf32, #tpu.memory_space<vmem>>, vector<1x128xf32>
    %c2 = arith.constant 2 : index
    %c0_8 = arith.constant 0 : index
    %6 = vector.load %arg3[%c2, %c0_8] : memref<6x128xf32, #tpu.memory_space<vmem>>, vector<1x128xf32>
    %c3 = arith.constant 3 : index
    %c0_9 = arith.constant 0 : index
    %7 = vector.load %arg3[%c3, %c0_9] : memref<6x128xf32, #tpu.memory_space<vmem>>, vector<2x128xf32>
    %c5 = arith.constant 5 : index
    %c0_10 = arith.constant 0 : index
    %8 = vector.load %arg3[%c5, %c0_10] : memref<6x128xf32, #tpu.memory_space<vmem>>, vector<1x128xf32>
    %9 = vector.broadcast %1 : vector<8x1xf32> to vector<8x128xf32>
    %10 = vector.broadcast %4 : vector<1x128xf32> to vector<8x128xf32>
    %11 = arith.mulf %9, %10 : vector<8x128xf32>
    %12 = vector.broadcast %3 : vector<8x1xf32> to vector<8x128xf32>
    %13 = vector.broadcast %5 : vector<1x128xf32> to vector<8x128xf32>
    %14 = arith.mulf %12, %13 : vector<8x128xf32>
    %15 = arith.addf %11, %14 : vector<8x128xf32>
    %16 = vector.broadcast %6 : vector<1x128xf32> to vector<8x128xf32>
    %17 = arith.addf %15, %16 : vector<8x128xf32>
    %18 = tpu.iota {dimensions = array<i32: 1>} : vector<8x128xi32>
    %c32_i32 = arith.constant 32 : i32
    %19 = vector.broadcast %c32_i32 : i32 to vector<8x128xi32>
    %20 = arith.cmpi slt, %18, %19 : vector<8x128xi32>
    %21 = math.tanh %17 : vector<8x128xf32>
    %cst = arith.constant 0.000000e+00 : f32
    %22 = vector.broadcast %cst : f32 to vector<8x128xf32>
    %23 = arith.maximumf %17, %22 : vector<8x128xf32>
    %24 = arith.select %20, %21, %23 : vector<8x128xi1>, vector<8x128xf32>
    %cst_11 = arith.constant dense<0.000000e+00> : vector<8x2xf32>
    %25 = tpu.matmul %24, %7, %cst_11 {dimension_numbers = #tpu.dot_dimension_numbers<[1], [1], [0], [0], [0, 0, 1, 0], [], []>} : vector<8x128xf32>, vector<2x128xf32>, vector<8x2xf32> -> vector<8x2xf32>
    %26 = vector.extract_strided_slice %8 {offsets = [0, 0], sizes = [1, 2], strides = [1, 1]} : vector<1x128xf32> to vector<1x2xf32>
    %27 = vector.broadcast %26 : vector<1x2xf32> to vector<8x2xf32>
    %28 = arith.addf %25, %27 : vector<8x2xf32>
    %29 = vector.extract_strided_slice %28 {offsets = [0, 0], sizes = [8, 1], strides = [1, 1]} : vector<8x2xf32> to vector<8x1xf32>
    %30 = vector.extract_strided_slice %28 {offsets = [0, 1], sizes = [8, 1], strides = [1, 1]} : vector<8x2xf32> to vector<8x1xf32>
    %31 = arith.addf %1, %3 : vector<8x1xf32>
    %32 = arith.mulf %30, %31 : vector<8x1xf32>
    %33 = vector.shape_cast %32 : vector<8x1xf32> to vector<1x8xf32>
    %34 = vector.broadcast %29 : vector<8x1xf32> to vector<8x8xf32>
    %35 = vector.broadcast %33 : vector<1x8xf32> to vector<8x8xf32>
    %36 = arith.addf %34, %35 : vector<8x8xf32>
    %c0_12 = arith.constant 0 : index
    %c0_13 = arith.constant 0 : index
    %c0_14 = arith.constant 0 : index
    %37 = vector.load %arg4[%c0_12, %c0_13, %c0_14] : memref<1x8x8xf32, #tpu.memory_space<vmem>>, vector<1x8x8xf32>
    %38 = vector.shape_cast %37 : vector<1x8x8xf32> to vector<8x8xf32>
    %39 = vector.shape_cast %36 : vector<8x8xf32> to vector<1x8x8xf32>
    tpu.vector_store %arg4[%c0_12, %c0_13, %c0_14], %39 {strides = array<i32>} : memref<1x8x8xf32, #tpu.memory_space<vmem>>, vector<1x8x8xf32>,
    return
  }
  func.func @transform_0(%arg0: i32) -> (i32, i32, i32) {
    %c0_i32 = arith.constant 0 : i32
    %c0_i32_0 = arith.constant 0 : i32
    %c0_i32_1 = arith.constant 0 : i32
    return %arg0, %c0_i32, %c0_i32_0 : i32, i32, i32
  }
  func.func @transform_1(%arg0: i32) -> (i32, i32, i32) {
    %c0_i32 = arith.constant 0 : i32
    %c0_i32_0 = arith.constant 0 : i32
    %c0_i32_1 = arith.constant 0 : i32
    return %arg0, %c0_i32, %c0_i32_0 : i32, i32, i32
  }
  func.func @transform_2(%arg0: i32) -> (i32, i32) {
    %c0_i32 = arith.constant 0 : i32
    %c0_i32_0 = arith.constant 0 : i32
    %c0_i32_1 = arith.constant 0 : i32
    return %c0_i32, %c0_i32_0 : i32, i32
  }
  func.func @transform_3(%arg0: i32) -> (i32, i32, i32) {
    %c0_i32 = arith.constant 0 : i32
    %c0_i32_0 = arith.constant 0 : i32
    %c0_i32_1 = arith.constant 0 : i32
    return %arg0, %c0_i32, %c0_i32_0 : i32, i32, i32
  }
}

</mosaic_0001>

<bundles_post_ra>
// kernel: hamiltonian_forward.1
= control target key start
LH: loop header
LB: loop body
LE: loop exit
PB: predicated region body
PF: predicated region fallthrough
CT: control target
= control target key end

     0   :  { %8 = vsyncpa [#allocation3], 0  ;;  %s695_s0 = inlined_call_operand.vmem [shape: f32[4,8,1], index: 0, kind: input, shape index: {}]   ;;  %s696_s1 = inlined_call_operand.vmem [shape: f32[4,8,1], index: 1, kind: input, shape index: {}]   ;;  %s697_s2 = inlined_call_operand.vmem [shape: f32[6,128], index: 2, kind: input, shape index: {}]   ;;  %s698_s3 = inlined_call_operand.hbm [shape: f32[4,8,8], index: 3, kind: output, shape index: {}]  }
   0x1   :  { %10 = vsyncpa [#allocation3 + $0x1], 0  ;;  %s577_s12 = smov 0   ;;  %s579_s13 = smov 0  }
   0x2   :  { %s581_s14 = smov 0   ;;  %s583_s15 = smov 0  }
   0x3 LB: > { %s598_s16 = sadd.s32 4294967295, %s549_s15   ;;  %s416_s17 = sadd.s32 4294967294, %s549_s15   ;;  %s549_s15 = sphi %s583_s15, %s704_s15   ;;  %s545_s14 = sphi %s581_s14, %s703_s14   ;;  %s541_s13 = sphi %s579_s13, %s702_s13   ;;  %s537_s12 = sphi %s577_s12, %s701_s12  }
   0x4   : > { %s602_s18 = sadd.s32 1, %s549_s15   ;;  %s96_s19 = sadd.s32 1, %s545_s14 }
   0x5   : > { %s93_s20 = ssub.s32 %s549_s15, %s602_s18  ;;  %p106_p0 = scmp.ne.s32.totalorder %s545_s14, %s541_s13 }
   0x6   : > { %p94_p1 = scmp.eq.s32.totalorder %s93_s20, 0  ;;  %p107_p2 = scmp.eq.s32.totalorder %s598_s16, 3 }
   0x7   : > { %p112_p3 = scmp.ne.s32.totalorder %s541_s13, %s537_s12  ;;  %p113_p4 = scmp.eq.s32.totalorder %s416_s17, 3 }
   0x8   : > { %s613_s21 = scalar_select %p94_p1, %s545_s14, %s96_s19  }
   0x9   : > { %p615_p5 = por %p107_p2, %p106_p0  ;;  %p619_p6 = por %p113_p4, %p112_p3 }
   0xa   : > { %p419_p7 = scmp.ge.s32.totalorder %s549_s15, 1  ;;  %p148_p8 = scmp.lt.s32.totalorder %s549_s15, 5 }
   0xc   : > { %p149_p9 = pnand %p419_p7, %p148_p8 }
   0xd   : > { %p175_p10 = scmp.lt.s32.totalorder (!%p149_p9), %s598_s16, 3  ;;  %v551_v0 = vmov (!%p149_p9), 0   ;;  %v188_v3 = vld [vmem:[%s697_s2 + $0x3] sm:$0x3] (!%p149_p9)  ;;  %v552_v4 = vmov (!%p149_p9), 0.0   ;;  %vm553_vm0 = vmmov (!%p149_p9), 0   ;;  %v216_v15 = vlaneseq (!%p149_p9) }
   0xe   : > { %152 = sbr.rel (%p149_p9) target bundleno = 538 (0x21a), region = 32  ;;  %482 = vset.pattern.permute.xlu0 (!%p149_p9), %v551_v0  ;;  %433 = vmatprep.subr.mxu0 (!%p149_p9), %v552_v4  ;;  %s554_s7 = smov (!%p149_p9), 1   ;;  %v423_v7 = vld [vmem:[%s697_s2] ss:$0 sm:$0xff] (!%p149_p9)  ;;  %v424_v8 = vld [vmem:[%s697_s2 + $0x1] ss:$0 sm:$0xff] (!%p149_p9) }
   0xf   : > { %435 = vmatprep.mubr.msk.f32.mxu0 (!%p149_p9), %vm553_vm0, %v552_v4  ;;  %434 = vmatpush3.xpose.msra.mxu0 (!%p149_p9), %v188_v3  ;;  %v425_v12 = vld [vmem:[%s697_s2 + $0x2] ss:$0 sm:$0xff] (!%p149_p9)  ;;  %v217_v16 = vand.u32 (!%p149_p9), 127, %v216_v15  ;;  %v555_v20 = vmov (!%p149_p9), 1   ;;  %v426_v21 = vld [vmem:[%s697_s2 + $0x5] ss:$0 sm:$0xff] (!%p149_p9) }
  0x10   : > { %483 = vset.pattern.permute.xlu1 (!%p149_p9), %v555_v20  ;;  %v312_v27 = vshrl.u32 (!%p149_p9), %v216_v15, 7  ;;  %s428_s27 = sshll.u32 (!%p149_p9), %s598_s16, 7  ;;  %vm329_vm2 = vcmask (!%p149_p9), 64512  }
  0x11   : > { %vm218_vm1 = vcmp.lt.s32.totalorder (!%p149_p9), %v217_v16, 32  ;;  %s653_s5 = scalar_lea.hbm (!%p149_p9), %s698_s3, %s428_s27 }
  0x12   : > { %v313_v28 = vsub.s32 (!%p149_p9), %v217_v16, %v312_v27 }
  0x15   : > { %s176_s24 = scalar_select %p175_p10, %s598_s16, 3 }
  0x16   : > { %s556_s16 = smov [#allocation2]  }
  0x17   : > { %s421_s25 = sshll.u32 %s176_s24, 3  ;;  %s491_s8 = sshll.u32 %s556_s16, 4  ;;  %s492_s8 = int_to_ptr.vmem [resolvable:$false] %s491_s8 }
  0x18   : > { %s178_s28 = scalar_lea.vmem %s695_s0, %s421_s25  ;;  %s182_s4 = scalar_lea.vmem %s696_s1, %s421_s25 }
  0x19   : > { %v183_v1 = vld [vmem:[%s178_s28] sm:$0xff]  ;;  %s172_s25 = sand.u32 1, %s541_s13   ;;  %s493_s9 = scalar_lea.vmem %s492_s8, 256 }
  0x1a   : > { %192 = vperm.xlu0 %482, %v183_v1   ;;  %v184_v2 = vld [vmem:[%s182_s4] sm:$0xff]  ;;  %s420_s26 = sshll.u32 %s172_s25, 3  ;;  %s332_s6 = scalar_lea.sflag [#allocation3], %s172_s25 }
  0x1b   : > { %v296_v5 = vadd.f32 %v184_v2, %v183_v1  ;;  %s174_s28 = scalar_lea.vmem [#allocation2], %s420_s26 }
  0x1c   : > { %s345_s29 = sshll.u32 %s174_s28, 4  ;;  %s655_s29 = int_to_ptr.vmem [resolvable:$true] %s345_s29 }
  0x1d   : > { %298 = vrot.lane.b32.xlu1 %v296_v5, %s554_s7  ;;  %s487_s7 = scalar_lea.vmem %s655_s29, 128  ;;  %p494_p0 = scmp.lt.s32.totalorder %s655_s29, %s492_s8 }
  0x1e   : > { %202 = vperm.xlu0 %482, %v184_v2   ;;  %p488_p11 = scmp.ne.s32.totalorder %s655_s29, %s487_s7  ;;  %p495_p1 = scmp.lt.s32.totalorder %s493_s9, %s487_s7 }
  0x20   : > { %p489_p12 = pnand %p488_p11, %p615_p5  ;;  %p496_p2 = por %p495_p1, %p494_p0 }
  0x22   : > { %p490_p13 = pneg %p489_p12 }
  0x24   : > { %p497_p3 = pnand %p496_p2, %p490_p13 }
  0x8f   : > { %v299_v23 = vpop.permute.xlu1 %298 }
  0x99   : > { %v193_v6 = vpop.permute.xlu0 %192 }
  0x9a   : > { %v199_v10 = vmul.f32 %v423_v7, %v193_v6 }
  0x9d   : > { %v203_v9 = vpop.permute.xlu0 %202 }
  0x9e   : > { %v209_v11 = vmul.f32 %v424_v8, %v203_v9 }
  0xa0   : > { %v210_v13 = vadd.f32 %v209_v11, %v199_v10 }
  0xa2   : > { %v215_v14 = vadd.f32 %v425_v12, %v210_v13 }
  0xa4   : > { %485 = vtanh.f32 %v215_v14  ;;  %v220_v17 = vmax.f32 %v215_v14, 0.0 }
  0xae   : > { %v486_v18 = vpop.eup %485 }
  0xaf   : > { %v221_v19 = vsel %vm218_vm1, %v486_v18, %v220_v17 }
  0xb0   : > { %436 = vmatmul.mubr.f32.vlgmr.msra.gmra.mrb[0].mxu0 %v221_v19 }
 0x183   : > { %v292_v22 = vpop.f32.mrb[0].mxu0 }
 0x184   : > { %v293_v24 = vadd.f32 %v426_v21, %v292_v22  ;;  %v437_v25 = vpop.f32.mrb[1].mxu0 }
 0x186   : > { %v301_v26 = vmul.f32 %v299_v23, %v293_v24  ;;  %304 = vperm.xlu0 %482, %v293_v24  }
 0x188   : > { %309 = vperm.xlu1 %483, %v301_v26  }
 0x18a   : > { %484 = vset.pattern.permute.xlu0 %v555_v20 }
 0x205   : > { %v305_v31 = vpop.permute.xlu0 %304 }
 0x207   : > { %v310_v29 = vpop.permute.xlu1 %309 }
 0x208   : > { %v314_v30 = vrot.slane %v310_v29, %v313_v28 }
 0x20a   : > { %v328_v32 = vadd.f32 %v314_v30, %v305_v31 }
 0x20c   : > { %330 = vst.msk [vmem:[%s174_s28] sm:$0xff] %vm329_vm2, %v328_v32 }
 0x20d   : > { %500 = shalt.err (!%p497_p3)
}
 0x20e   : > { %s501_s10 = scalar_lea.hbm %s653_s5, 128  ;;  %s505_s19 = scalar_lea.hbm %s698_s3, 512 }
 0x20f   : > { %p502_p4 = scmp.ne.s32.totalorder %s653_s5, %s501_s10  ;;  %p506_p9 = scmp.lt.u32.totalorder %s653_s5, %s698_s3 }
 0x210   : > { %p507_p10 = scmp.lt.u32.totalorder %s505_s19, %s501_s10  ;;  %p509_p12 = scmp.lt.u32.totalorder %s501_s10, %s653_s5 }
 0x211   : > { %p503_p7 = pnand %p502_p4, %p615_p5 }
 0x212   : > { %p508_p11 = por %p507_p10, %p506_p9 }
 0x213   : > { %p504_p8 = pneg %p503_p7 }
 0x214   : > { %p510_p13 = por %p509_p12, %p508_p11 }
 0x216   : > { %p511_p0 = pnand %p510_p13, %p504_p8 }
 0x218   : > { %514 = shalt.err (!%p511_p0)
}
 0x219   : > { %438 = dma.vmem_to_hbm [thread:$0]  (%p615_p5), %s655_s29, 128, %s653_s5, %s332_s6  }
 0x21a PF: > { %p444_p1 = scmp.ge.s32.totalorder %s549_s15, 2  ;;  %s357_s25 = sand.u32 1, %s537_s12  }
 0x21b   : > { %s358_s26 = scalar_lea.sflag [#allocation3], %s357_s25 }
 0x21c   : > { %p441_p2 = pnand %p444_p1, %p619_p6 }
 0x21e   : > { %532 = dma.done.wait (!%p441_p2), %s358_s26, 128  }
 0x21f   : > { %534 = vsyncadd (!%p441_p2), %s358_s26, 4294967168  ;;  %p13_p3 = scmp.ge.s32.totalorder %s602_s18, 6   ;;  %s701_s12 = smov %s541_s13 }
 0x220   : > { %s702_s13 = smov %s545_s14  ;;  %s703_s14 = smov %s613_s21 }
 0x221   : > { %s704_s15 = smov %s602_s18  ;;  %15 = sbr.rel (!%p13_p3) target bundleno = 3 (0x3), region = 70 }
 0x228   :  { %363 = vsyncpa [#allocation3], 1 }
 0x229   :  { %365 = vsyncpa [#allocation3 + $0x1], 1 }

</bundles_post_ra>
